<compile_context>
chip_gen: v7x
topology: tpu7x:2x2x1
jax: 0.10.0
libtpu: 0.0.40
codegen_flags: <defaults>
</compile_context>

<pallas_src>
import functools

import jax
import jax.numpy as jnp
from jax.experimental import pallas as pl
from jax.experimental.pallas import tpu as pltpu


DEFAULT_TB = 512  # batch rows (lanes) per grid step; multiple of 128


def _round_up(n, m):
    return ((n + m - 1) // m) * m


def lmf_kernel(u_ref, v_ref, bias_ref, out_ref, *, mu):
    # u_ref, v_ref : VMEM (D, TB)  gathered+transposed embedding rows (native dtype)
    # bias_ref     : VMEM (1, TB)  f32, b_u[uid] + b_i[iid] (wrapper-gathered)
    # out_ref      : VMEM (1, TB)  f32
    u = u_ref[...].astype(jnp.float32)
    v = v_ref[...].astype(jnp.float32)
    # One vectorized multiply over the whole (D, TB) tile and a sublane (axis-0)
    # reduce: the (1, TB) result is already in the lane-dense layout of the
    # output block -- no transpose / relayout needed.
    dot = jnp.sum(u * v, axis=0, keepdims=True)                 # (1, TB) f32
    logit = mu + dot + bias_ref[...]
    # sigmoid(logit) = 1 / (1 + exp(-logit)); exp -> EUP, approx recip -> EUP.
    prob = pl.reciprocal(1.0 + jnp.exp(-logit), approx=True)
    out_ref[...] = prob.astype(out_ref.dtype)


def lmf_forward(x, user_emb, item_emb, b_u, b_i, mu, *, tb=DEFAULT_TB):
    B = x.shape[0]
    n_users, D = user_emb.shape
    n_items = item_emb.shape[0]

    # Clamp ids defensively, then pad the batch so every grid step stores a full
    # lane-dense (1, tb) block (tb is a multiple of 128; shrunk for tiny batches).
    uid = jnp.clip(x[:, 0].astype(jnp.int32), 0, n_users - 1)
    iid = jnp.clip(x[:, 1].astype(jnp.int32), 0, n_items - 1)

    tb = min(tb, _round_up(max(B, 1), 128))
    B_pad = _round_up(B, tb)
    pad = B_pad - B
    uid_p = jnp.pad(uid, (0, pad))          # pad rows reuse id 0, sliced off below
    iid_p = jnp.pad(iid, (0, pad))

    # Row gathers in the wrapper (XLA gather): the kernel becomes a pure
    # streaming multiply/reduce/sigmoid that BlockSpec pipelining hides behind
    # HBM DMA, and no table has to be VMEM-resident.  Native table dtype is kept
    # (kernel upcasts); swapaxes puts the hidden dim on sublanes so the kernel's
    # reduce produces the lane-dense output layout directly.
    u_g = jnp.take(user_emb, uid_p, axis=0).swapaxes(0, 1)      # (D, B_pad)
    v_g = jnp.take(item_emb, iid_p, axis=0).swapaxes(0, 1)      # (D, B_pad)
    bias = (jnp.take(b_u, uid_p) + jnp.take(b_i, iid_p)).astype(jnp.float32)
    bias = bias.reshape(1, B_pad)                                # (1, B_pad)

    grid = (B_pad // tb,)

    # Explicit VMEM budget from the actual per-step block footprint
    # (2x gathered-row blocks + bias + out, double-buffered) plus headroom.
    tbl_itemsize = jnp.dtype(user_emb.dtype).itemsize
    block_bytes = 2 * D * tb * tbl_itemsize + 2 * tb * 4
    vmem_bytes = min(64 * 1024 * 1024, 8 * block_bytes + (4 << 20))

    out = pl.pallas_call(
        functools.partial(lmf_kernel, mu=float(mu)),
        grid_spec=pltpu.PrefetchScalarGridSpec(
            num_scalar_prefetch=0,
            grid=grid,
            in_specs=[
                pl.BlockSpec((D, tb), lambda g: (0, g)),   # gathered user rows
                pl.BlockSpec((D, tb), lambda g: (0, g)),   # gathered item rows
                pl.BlockSpec((1, tb), lambda g: (0, g)),   # bias
            ],
            out_specs=pl.BlockSpec((1, tb), lambda g: (0, g)),
        ),
        out_shape=jax.ShapeDtypeStruct((1, B_pad), jnp.float32),
        compiler_params=pltpu.CompilerParams(
            dimension_semantics=("parallel",),
            vmem_limit_bytes=vmem_bytes,
        ),
    )(u_g, v_g, bias)

    return out.reshape(B_pad)[:B]


def _reference(x, user_emb, item_emb, b_u, b_i, mu):
    uid = x[:, 0]
    iid = x[:, 1]
    u_x = user_emb[uid]
    i_x = item_emb[iid]
    logit = mu + jnp.sum(u_x * i_x, axis=1) + b_u[uid] + b_i[iid]
    return 1.0 / (1.0 + jnp.exp(-logit))


if __name__ == "__main__":
    # Small deterministic synthetic problem (stand-in for args.* config).
    n_users, n_items = 64, 48
    hidden_dim = 32
    n_rows, n_neg = 100, 1
    mu = n_rows / (n_rows + n_users * n_neg)          # 100 / 164

    key = jax.random.PRNGKey(0)
    k_u, k_i = jax.random.split(key)

    # xavier_normal_ on an (N, D) embedding weight: std = sqrt(2 / (N + D))
    std_u = (2.0 / (n_users + hidden_dim)) ** 0.5
    std_i = (2.0 / (n_items + hidden_dim)) ** 0.5
    user_emb = (jax.random.normal(k_u, (n_users, hidden_dim)) * std_u).astype(jnp.float32)
    item_emb = (jax.random.normal(k_i, (n_items, hidden_dim)) * std_i).astype(jnp.float32)
    b_u = jnp.zeros((n_users,), jnp.float32)
    b_i = jnp.zeros((n_items,), jnp.float32)

    ok = True
    for batch in (8, 300, 1200):   # sub-block (padded), single-block, multi-block grid
        ku, ki = jax.random.split(jax.random.fold_in(key, batch))
        uid = jax.random.randint(ku, (batch,), 0, n_users, dtype=jnp.int32)
        iid = jax.random.randint(ki, (batch,), 0, n_items, dtype=jnp.int32)
        x = jnp.stack([uid, iid], axis=1)            # (B, 2) int32

        out = jax.block_until_ready(lmf_forward(x, user_emb, item_emb, b_u, b_i, mu))
        ref = _reference(x, user_emb, item_emb, b_u, b_i, mu)

        assert out.shape == (batch,)
        # Tolerance covers the approximate EUP reciprocal in the sigmoid.
        ok &= bool(jnp.allclose(out, ref, atol=5e-3, rtol=5e-3))

    assert ok
    print("KERNEL_OK")
</pallas_src>

<mosaic_0001>
module attributes {stable_mosaic.version = 11 : i64} {
  func.func @lmf_kernel(%arg0: i32, %arg1: memref<32x128xf32, #tpu.memory_space<vmem>>, %arg2: memref<32x128xf32, #tpu.memory_space<vmem>>, %arg3: memref<1x128xf32, #tpu.memory_space<vmem>>, %arg4: memref<1x128xf32, #tpu.memory_space<vmem>>) attributes {dimension_semantics = [#tpu.dimension_semantics<parallel>], iteration_bounds = array<i64: 1>, scalar_prefetch = 0 : i64, scratch_operands = 0 : i64, tpu.core_type = #tpu.core_type<tc>, window_params = [{transform_indices = @transform_0, window_bounds = array<i64: 32, 128>}, {transform_indices = @transform_1, window_bounds = array<i64: 32, 128>}, {transform_indices = @transform_2, window_bounds = array<i64: 1, 128>}, {transform_indices = @transform_3, window_bounds = array<i64: 1, 128>}]} {
    %c0 = arith.constant 0 : index
    %c0_0 = arith.constant 0 : index
    %0 = vector.load %arg1[%c0, %c0_0] : memref<32x128xf32, #tpu.memory_space<vmem>>, vector<32x128xf32>
    %c0_1 = arith.constant 0 : index
    %c0_2 = arith.constant 0 : index
    %1 = vector.load %arg2[%c0_1, %c0_2] : memref<32x128xf32, #tpu.memory_space<vmem>>, vector<32x128xf32>
    %2 = arith.mulf %0, %1 : vector<32x128xf32>
    %cst = arith.constant dense<0.000000e+00> : vector<128xf32>
    %3 = vector.multi_reduction <add>, %2, %cst [0] : vector<32x128xf32> to vector<128xf32>
    %4 = vector.shape_cast %3 : vector<128xf32> to vector<1x128xf32>
    %cst_3 = arith.constant 0.609756112 : f32
    %5 = vector.broadcast %cst_3 : f32 to vector<1x128xf32>
    %6 = arith.addf %5, %4 : vector<1x128xf32>
    %c0_4 = arith.constant 0 : index
    %c0_5 = arith.constant 0 : index
    %7 = vector.load %arg3[%c0_4, %c0_5] : memref<1x128xf32, #tpu.memory_space<vmem>>, vector<1x128xf32>
    %8 = arith.addf %6, %7 : vector<1x128xf32>
    %cst_6 = arith.constant 0.000000e+00 : f32
    %9 = vector.broadcast %cst_6 : f32 to vector<1x128xf32>
    %10 = arith.subf %9, %8 : vector<1x128xf32>
    %11 = math.exp %10 : vector<1x128xf32>
    %cst_7 = arith.constant 1.000000e+00 : f32
    %12 = vector.broadcast %cst_7 : f32 to vector<1x128xf32>
    %13 = arith.addf %12, %11 : vector<1x128xf32>
    %14 = tpu.reciprocal %13 {approx = true} : vector<1x128xf32> -> vector<1x128xf32>
    %c0_8 = arith.constant 0 : index
    %c0_9 = arith.constant 0 : index
    %15 = vector.load %arg4[%c0_8, %c0_9] : memref<1x128xf32, #tpu.memory_space<vmem>>, vector<1x128xf32>
    tpu.vector_store %arg4[%c0_8, %c0_9], %14 {strides = array<i32>} : memref<1x128xf32, #tpu.memory_space<vmem>>, vector<1x128xf32>,
    return
  }
  func.func @transform_0(%arg0: i32) -> (i32, i32) {
    %c0_i32 = arith.constant 0 : i32
    %c0_i32_0 = arith.constant 0 : i32
    return %c0_i32, %arg0 : i32, i32
  }
  func.func @transform_1(%arg0: i32) -> (i32, i32) {
    %c0_i32 = arith.constant 0 : i32
    %c0_i32_0 = arith.constant 0 : i32
    return %c0_i32, %arg0 : i32, i32
  }
  func.func @transform_2(%arg0: i32) -> (i32, i32) {
    %c0_i32 = arith.constant 0 : i32
    %c0_i32_0 = arith.constant 0 : i32
    return %c0_i32, %arg0 : i32, i32
  }
  func.func @transform_3(%arg0: i32) -> (i32, i32) {
    %c0_i32 = arith.constant 0 : i32
    %c0_i32_0 = arith.constant 0 : i32
    return %c0_i32, %arg0 : i32, i32
  }
}

</mosaic_0001>

<bundles_post_ra>
// kernel: tpu_custom_call.1
= control target key start
LH: loop header
LB: loop body
LE: loop exit
PB: predicated region body
PF: predicated region fallthrough
CT: control target
= control target key end

     0   :  { %8 = vsyncpa [#allocation3], 0  ;;  %s234_s0 = inlined_call_operand.hbm [shape: f32[32,128], index: 0, kind: input, shape index: {}]   ;;  %s235_s1 = inlined_call_operand.hbm [shape: f32[32,128], index: 1, kind: input, shape index: {}]   ;;  %s236_s2 = inlined_call_operand.vmem [shape: f32[1,128], index: 2, kind: input, shape index: {}]   ;;  %s237_s3 = inlined_call_operand.hbm [shape: f32[1,128], index: 3, kind: output, shape index: {}]  }
   0x1   :  { %9 = vsyncpa [#allocation6], 0 }
   0x2   :  { %10 = vsyncpa [#allocation4], 0  ;;  %s170_s12 = smov [#allocation2]   ;;  %s98_s16 = scalar_lea.hbm %s234_s0, 512 }
   0x3   :  { %s16_s13 = sshll.u32 %s170_s12, 4  ;;  %p99_p0 = scmp.ne.s32.totalorder %s234_s0, %s98_s16  ;;  %s17_s13 = int_to_ptr.vmem [resolvable:$true] %s16_s13 }
   0x4   :  { %p102_p1 = scmp.lt.u32.totalorder %s98_s16, %s234_s0 }
   0x6   :  { %p104_p2 = pnand %p102_p1, %p99_p0 }
   0x8   :  { %107 = shalt.err (!%p104_p2)
}
   0x9   :  { %s108_s21 = scalar_lea.vmem %s17_s13, 512  ;;  %p113_p4 = scmp.lt.s32.totalorder %s17_s13, %s17_s13 }
   0xa   :  { %p109_p3 = scmp.ne.s32.totalorder %s17_s13, %s108_s21  ;;  %p114_p5 = scmp.lt.s32.totalorder %s108_s21, %s108_s21 }
   0xc   :  { %p115_p6 = por %p114_p5, %p113_p4 }
   0xe   :  { %p116_p7 = pnand %p115_p6, %p109_p3 }
  0x10   :  { %119 = shalt.err (!%p116_p7)
}
  0x11   :  { %s171_s22 = smov 128   ;;  %s172_s23 = smov 8  }
  0x12   :  { %22 = dma.hbm_to_vmem [thread:$0]  %s234_s0, 512, %s17_s13, [#allocation3], %s171_s22, %s171_s22, %s172_s23  }
  0x13   :  { %s173_s26 = smov [#allocation5]   ;;  %s120_s30 = scalar_lea.hbm %s235_s1, 512 }
  0x14   :  { %s28_s27 = sshll.u32 %s173_s26, 4  ;;  %p121_p8 = scmp.ne.s32.totalorder %s235_s1, %s120_s30  ;;  %s29_s27 = int_to_ptr.vmem [resolvable:$true] %s28_s27 }
  0x15   :  { %p124_p9 = scmp.lt.u32.totalorder %s120_s30, %s235_s1 }
  0x17   :  { %p126_p10 = pnand %p124_p9, %p121_p8 }
  0x19   :  { %129 = shalt.err (!%p126_p10)
}
  0x1a   :  { %s130_s8 = scalar_lea.vmem %s29_s27, 512  ;;  %p135_p12 = scmp.lt.s32.totalorder %s29_s27, %s29_s27 }
  0x1b   :  { %p131_p11 = scmp.ne.s32.totalorder %s29_s27, %s130_s8  ;;  %p136_p13 = scmp.lt.s32.totalorder %s130_s8, %s130_s8 }
  0x1d   :  { %p137_p0 = por %p136_p13, %p135_p12 }
  0x1f   :  { %p138_p1 = pnand %p137_p0, %p131_p11 }
  0x21   :  { %141 = shalt.err (!%p138_p1)
}
  0x22   :  { %34 = dma.hbm_to_vmem [thread:$0]  %s235_s1, 512, %s29_s27, [#allocation6], %s171_s22, %s171_s22, %s172_s23  }
  0x23   :  { %164 = dma.done.wait [#allocation3], 512  }
  0x24   :  { %165 = vsyncadd [#allocation3], 4294966784 }
  0x25   :  { %166 = dma.done.wait [#allocation6], 512  }
  0x26   :  { %167 = vsyncadd [#allocation6], 4294966784  ;;  %v43_v0 = vld [vmem:[#allocation2] sm:$0xff]  ;;  %v44_v1 = vld [vmem:[#allocation2 + $0x8] sm:$0xff]  ;;  %s174_s11 = smov [#allocation7]  }
  0x27   :  { %v45_v2 = vld [vmem:[#allocation2 + $0x10] sm:$0xff]  ;;  %v46_v3 = vld [vmem:[#allocation2 + $0x18] sm:$0xff]  ;;  %v47_v4 = vld [vmem:[#allocation5] sm:$0xff]  ;;  %s79_s12 = sshll.u32 %s174_s11, 4  ;;  %s80_s12 = int_to_ptr.vmem [resolvable:$true] %s79_s12 }
  0x28   :  { %v48_v5 = vld [vmem:[#allocation5 + $0x8] sm:$0xff]  ;;  %v49_v6 = vld [vmem:[#allocation5 + $0x10] sm:$0xff]  ;;  %v50_v7 = vld [vmem:[#allocation5 + $0x18] sm:$0xff]  ;;  %v51_v8 = vmul.f32 %v47_v4, %v43_v0  ;;  %s142_s13 = scalar_lea.vmem %s80_s12, 16  ;;  %s146_s14 = scalar_lea.vmem %s80_s12, 32 }
  0x29   :  { %v52_v9 = vmul.f32 %v48_v5, %v44_v1  ;;  %v53_v10 = vmul.f32 %v49_v6, %v45_v2  ;;  %v54_v11 = vmul.f32 %v50_v7, %v46_v3  ;;  %v65_v21 = vld [vmem:[%s236_s2] sm:$0x1]  ;;  %p143_p2 = scmp.ne.s32.totalorder %s80_s12, %s142_s13  ;;  %p147_p3 = scmp.lt.s32.totalorder %s80_s12, %s80_s12 }
  0x2a   :  { %p148_p4 = scmp.lt.s32.totalorder %s146_s14, %s142_s13 }
  0x2b   :  { %v55_v12 = vadd.f32 %v52_v9, %v51_v8 }
  0x2c   :  { %p149_p5 = por %p148_p4, %p147_p3 }
  0x2d   :  { %v56_v13 = vadd.f32 %v55_v12, %v53_v10 }
  0x2e   :  { %p150_p6 = pnand %p149_p5, %p143_p2 }
  0x2f   :  { %v57_v14 = vadd.f32 %v56_v13, %v54_v11 }
  0x31   :  { %v58_v15 = vrot.slane %v57_v14, 4 }
  0x33   :  { %v59_v16 = vadd.f32 %v58_v15, %v57_v14 }
  0x35   :  { %v60_v17 = vrot.slane %v59_v16, 2 }
  0x37   :  { %v61_v18 = vadd.f32 %v60_v17, %v59_v16 }
  0x39   :  { %v62_v19 = vrot.slane %v61_v18, 1 }
  0x3b   :  { %v63_v20 = vadd.f32 %v62_v19, %v61_v18 }
  0x3d   :  { %v64_v22 = vadd.f32 0.6097561, %v63_v20 }
  0x3f   :  { %v66_v23 = vadd.f32 %v65_v21, %v64_v22 }
  0x41   :  { %v67_v24 = vsub.f32 0.0, %v66_v23 }
  0x43   :  { %v68_v25 = vmul.f32 1.442695, %v67_v24 }
  0x45   :  { %94 = vpow2.f32 %v68_v25 }
  0x4f   :  { %v95_v26 = vpop.eup %94 }
  0x50   :  { %v70_v27 = vadd.f32 1.0, %v95_v26 }
  0x52   :  { %96 = vrcp.f32 %v70_v27 }
  0x5c   :  { %v97_v28 = vpop.eup %96 }
  0x5d   :  { %72 = vst [vmem:[#allocation7] sm:$0x1] %v97_v28 }
  0x5e   :  { %153 = shalt.err (!%p150_p6)
}
  0x5f   :  { %s154_s16 = scalar_lea.hbm %s237_s3, 16 }
  0x60   :  { %p155_p7 = scmp.ne.s32.totalorder %s237_s3, %s154_s16  ;;  %p158_p8 = scmp.lt.u32.totalorder %s154_s16, %s237_s3 }
  0x62   :  { %p160_p9 = pnand %p158_p8, %p155_p7 }
  0x64   :  { %163 = shalt.err (!%p160_p9)
}
  0x65   :  { %82 = dma.vmem_to_hbm [thread:$0]  %s80_s12, 16, %s237_s3, [#allocation4]  }
  0x66   :  { %168 = dma.done.wait [#allocation4], 16  }
  0x67   :  { %169 = vsyncadd [#allocation4], 4294967280 }
  0x68   :  { %86 = vsyncpa [#allocation3], 1 }
  0x69   :  { %87 = vsyncpa [#allocation6], 1 }
  0x6a   :  { %88 = vsyncpa [#allocation4], 1 }

</bundles_post_ra>
